<compile_context>
chip_gen: v7x
topology: tpu7x:2x2x1
jax: 0.10.0
libtpu: 0.0.40
codegen_flags: <defaults>
</compile_context>

<pallas_src>
import functools

import jax
import jax.numpy as jnp
from jax.experimental import pallas as pl
from jax.experimental.pallas import tpu as pltpu

EPS = 1e-5


def _round_up(v, m):
    return ((v + m - 1) // m) * m


def _double_net_kernel(x_ref, w1_ref, w2_ref, o_ref, xp_ref, *, H, W, PAD, C1p, C2p):
    """One batch element: two fused (conv3x3 'same' -> InstanceNorm2d -> ReLU) blocks.

    x_ref : (1, Cin, H*W)     input, channels on sublanes, flat spatial on lanes
    w1_ref: (C2p, 9*C1p)      layer-1 weights, columns = (dy*3+dx)*C1p + ci
    w2_ref: (Cout, 9*C2p)     layer-2 weights
    o_ref : (1, Cout, H*W)    output (lane-dense: last dim = H*W)
    xp_ref: (max(C1p,C2p), PAD+H*W+PAD) f32 VMEM scratch holding the zero-padded
            flattened activation of the current layer.
    """
    HW = H * W
    col = jax.lax.broadcasted_iota(jnp.int32, (1, HW), 1) % W
    # Column-validity masks per horizontal tap offset (dx-1 = -1, 0, +1).
    # Row out-of-bounds taps land in the zeroed halo of the scratch -> no row mask.
    col_masks = (col >= 1, None, col <= W - 2)

    def conv_in_relu(x_val, w_flat, c_pad):
        c_in = x_val.shape[0]
        # Zero-padded copy of the activation in VMEM.  Rows c_in..c_pad stay zero,
        # which also realises the input-channel padding to a multiple of 8.
        xp_ref[...] = jnp.zeros_like(xp_ref)
        xp_ref[0:c_in, PAD:PAD + HW] = x_val
        taps = []
        for dy in range(3):
            for dx in range(3):
                s = (dy - 1) * W + (dx - 1)
                t = xp_ref[0:c_pad, PAD + s:PAD + s + HW]        # (c_pad, HW)
                m = col_masks[dx]
                if m is not None:
                    t = jnp.where(m, t, 0.0)
                taps.append(t)
        stacked = jnp.concatenate(taps, axis=0)                  # (9*c_pad, HW)
        # Whole 3x3 conv as a single MXU matmul, f32 accumulation.
        acc = jnp.dot(w_flat, stacked, preferred_element_type=jnp.float32)
        # InstanceNorm2d (no affine, biased variance, eps=1e-5) over the lane axis.
        mean = jnp.mean(acc, axis=1, keepdims=True)
        cent = acc - mean
        var = jnp.mean(cent * cent, axis=1, keepdims=True)
        return jnp.maximum(cent * jax.lax.rsqrt(var + EPS), 0.0)

    h = conv_in_relu(x_ref[0].astype(jnp.float32), w1_ref[...], C1p)  # (C2p, HW)
    y = conv_in_relu(h, w2_ref[...], C2p)                             # (Cout, HW)
    o_ref[0] = y.astype(o_ref.dtype)


def _flatten_weight(w_hwio, cin_pad):
    """(3,3,Cin,Cout) HWIO -> (Cout, 9*cin_pad); column index = (dy*3+dx)*cin_pad+ci."""
    kh, kw, cin, cout = w_hwio.shape
    w = jnp.pad(w_hwio, ((0, 0), (0, 0), (0, cin_pad - cin), (0, 0)))
    return jnp.transpose(w, (3, 0, 1, 2)).reshape(cout, kh * kw * cin_pad)


@jax.jit
def double_net_forward(x_nchw, params):
    """Forward pass of doubleNet. Input/output layout: NCHW (PyTorch)."""
    N, Cin, H, W = x_nchw.shape
    HW = H * W
    w1, w2 = params["w1"], params["w2"]          # HWIO conv weights
    Cmid, Cout = w1.shape[-1], w2.shape[-1]
    C1p = _round_up(Cin, 8)
    C2p = _round_up(Cmid, 8)
    PAD = _round_up(W + 1, 128)

    # Biases are intentionally NOT passed to the kernel: InstanceNorm2d with no
    # affine subtracts the per-channel spatial mean, so '+ bias' cancels exactly.
    w1f = jnp.pad(_flatten_weight(w1, C1p), ((0, C2p - Cmid), (0, 0)))  # (C2p, 9*C1p)
    w2f = _flatten_weight(w2, C2p)                                      # (Cout, 9*C2p)

    x = x_nchw.reshape(N, Cin, HW)   # free reshape; NCHW already has C on sublanes

    kernel = functools.partial(_double_net_kernel, H=H, W=W, PAD=PAD,
                               C1p=C1p, C2p=C2p)
    out = pl.pallas_call(
        kernel,
        out_shape=jax.ShapeDtypeStruct((N, Cout, HW), jnp.float32),
        grid_spec=pltpu.PrefetchScalarGridSpec(
            num_scalar_prefetch=0,
            grid=(N,),
            in_specs=[
                pl.BlockSpec((1, Cin, HW), lambda n: (n, 0, 0)),
                pl.BlockSpec((C2p, 9 * C1p), lambda n: (0, 0)),
                pl.BlockSpec((Cout, 9 * C2p), lambda n: (0, 0)),
            ],
            out_specs=pl.BlockSpec((1, Cout, HW), lambda n: (n, 0, 0)),
            scratch_shapes=[
                pltpu.VMEM((max(C1p, C2p), PAD + HW + PAD), jnp.float32),
            ],
        ),
        compiler_params=pltpu.CompilerParams(
            dimension_semantics=("parallel",)),
    )(x, w1f, w2f)
    return out.reshape(N, Cout, H, W)


def init_double_net_params(key, i_channel, o_channel, m_channel=None):
    """Deterministic parameter init matching the module's shapes (HWIO weights)."""
    if not m_channel:
        m_channel = o_channel
    k1, k2, k3, k4 = jax.random.split(key, 4)
    w1 = jax.random.normal(k1, (3, 3, i_channel, m_channel), jnp.float32) * 0.1
    b1 = jax.random.normal(k2, (m_channel,), jnp.float32) * 0.1
    w2 = jax.random.normal(k3, (3, 3, m_channel, o_channel), jnp.float32) * 0.1
    b2 = jax.random.normal(k4, (o_channel,), jnp.float32) * 0.1
    return dict(w1=w1, b1=b1, w2=w2, b2=b2)


def _reference_forward(x_nchw, params):
    """Pure-JAX reference (lax conv + bias + instance norm + relu) for validation."""
    def block(x, w_hwio, b):
        y = jax.lax.conv_general_dilated(
            x, w_hwio, window_strides=(1, 1), padding="SAME",
            dimension_numbers=("NCHW", "HWIO", "NCHW"))
        y = y + b[None, :, None, None]
        mean = jnp.mean(y, axis=(2, 3), keepdims=True)
        var = jnp.mean((y - mean) ** 2, axis=(2, 3), keepdims=True)
        y = (y - mean) * jax.lax.rsqrt(var + EPS)
        return jnp.maximum(y, 0.0)

    y = block(x_nchw, params["w1"], params["b1"])
    y = block(y, params["w2"], params["b2"])
    return y


if __name__ == "__main__":
    key = jax.random.PRNGKey(0)
    k_x, k_p = jax.random.split(key)

    # Small shapes consistent with the module: N=2, Cin=4, H=W=16, Cout=8.
    N, Cin, H, W = 2, 4, 16, 16
    Cout = 8
    x = jax.random.normal(k_x, (N, Cin, H, W), jnp.float32)

    params = init_double_net_params(k_p, i_channel=Cin, o_channel=Cout)

    out = double_net_forward(x, params)
    out = jax.block_until_ready(out)

    ref = _reference_forward(x, params)
    assert out.shape == (N, Cout, H, W), out.shape
    assert jnp.allclose(out, ref, atol=1e-4, rtol=1e-4), (
        float(jnp.max(jnp.abs(out - ref))))

    print("KERNEL_OK")
</pallas_src>

<mosaic_0001>
module attributes {stable_mosaic.version = 11 : i64} {
  func.func @_double_net_kernel(%arg0: i32, %arg1: memref<1x4x256xf32, #tpu.memory_space<vmem>>, %arg2: memref<8x72xf32, #tpu.memory_space<vmem>>, %arg3: memref<8x72xf32, #tpu.memory_space<vmem>>, %arg4: memref<1x8x256xf32, #tpu.memory_space<vmem>>, %arg5: memref<8x512xf32, #tpu.memory_space<vmem>>) attributes {dimension_semantics = [#tpu.dimension_semantics<parallel>], iteration_bounds = array<i64: 2>, scalar_prefetch = 0 : i64, scratch_operands = 1 : i64, tpu.core_type = #tpu.core_type<tc>, window_params = [{transform_indices = @transform_0, window_bounds = array<i64: 1, 4, 256>}, {pipeline_mode = #tpu.pipeline_mode<synchronous>, transform_indices = @transform_1, window_bounds = array<i64: 8, 72>}, {pipeline_mode = #tpu.pipeline_mode<synchronous>, transform_indices = @transform_2, window_bounds = array<i64: 8, 72>}, {transform_indices = @transform_3, window_bounds = array<i64: 1, 8, 256>}]} {
    %0 = tpu.iota {dimensions = array<i32: 1>} : vector<1x256xi32>
    %c16_i32 = arith.constant 16 : i32
    %c0_i32 = arith.constant 0 : i32
    %1 = arith.cmpi eq, %c16_i32, %c0_i32 : i32
    %c1_i32 = arith.constant 1 : i32
    %2 = arith.select %1, %c1_i32, %c16_i32 : i32
    %3 = vector.broadcast %2 : i32 to vector<1x256xi32>
    %4 = arith.remsi %0, %3 : vector<1x256xi32>
    %c0_i32_0 = arith.constant 0 : i32
    %5 = vector.broadcast %c0_i32_0 : i32 to vector<1x256xi32>
    %6 = arith.cmpi ne, %4, %5 : vector<1x256xi32>
    %c0_i32_1 = arith.constant 0 : i32
    %7 = vector.broadcast %c0_i32_1 : i32 to vector<1x256xi32>
    %8 = arith.cmpi slt, %4, %7 : vector<1x256xi32>
    %c0_i32_2 = arith.constant 0 : i32
    %9 = arith.cmpi slt, %2, %c0_i32_2 : i32
    %10 = vector.broadcast %9 : i1 to vector<1x256xi1>
    %11 = vector.broadcast %10 : vector<1x256xi1> to vector<1x256xi1>
    %12 = arith.xori %8, %11 : vector<1x256xi1>
    %13 = arith.andi %12, %6 : vector<1x256xi1>
    %14 = vector.broadcast %2 : i32 to vector<1x256xi32>
    %15 = arith.addi %4, %14 : vector<1x256xi32>
    %16 = arith.select %13, %15, %4 : vector<1x256xi1>, vector<1x256xi32>
    %c1_i32_3 = arith.constant 1 : i32
    %17 = vector.broadcast %c1_i32_3 : i32 to vector<1x256xi32>
    %18 = arith.cmpi sge, %16, %17 : vector<1x256xi32>
    %c14_i32 = arith.constant 14 : i32
    %19 = vector.broadcast %c14_i32 : i32 to vector<1x256xi32>
    %20 = arith.cmpi sle, %16, %19 : vector<1x256xi32>
    %c0 = arith.constant 0 : index
    %c0_4 = arith.constant 0 : index
    %c0_5 = arith.constant 0 : index
    %21 = vector.load %arg1[%c0, %c0_4, %c0_5] : memref<1x4x256xf32, #tpu.memory_space<vmem>>, vector<1x4x256xf32>
    %22 = vector.shape_cast %21 : vector<1x4x256xf32> to vector<4x256xf32>
    %c0_6 = arith.constant 0 : index
    %c0_7 = arith.constant 0 : index
    %23 = vector.load %arg2[%c0_6, %c0_7] : memref<8x72xf32, #tpu.memory_space<vmem>>, vector<8x72xf32>
    %cst = arith.constant 0.000000e+00 : f32
    %24 = vector.broadcast %cst : f32 to vector<8x512xf32>
    %c0_8 = arith.constant 0 : index
    %c0_9 = arith.constant 0 : index
    %25 = vector.load %arg5[%c0_8, %c0_9] : memref<8x512xf32, #tpu.memory_space<vmem>>, vector<8x512xf32>
    tpu.vector_store %arg5[%c0_8, %c0_9], %24 {strides = array<i32>} : memref<8x512xf32, #tpu.memory_space<vmem>>, vector<8x512xf32>,
    %c0_10 = arith.constant 0 : index
    %c128 = arith.constant 128 : index
    %26 = vector.load %arg5[%c0_10, %c128] : memref<8x512xf32, #tpu.memory_space<vmem>>, vector<4x256xf32>
    tpu.vector_store %arg5[%c0_10, %c128], %22 {strides = array<i32>} : memref<8x512xf32, #tpu.memory_space<vmem>>, vector<4x256xf32>,
    %c0_11 = arith.constant 0 : index
    %c111 = arith.constant 111 : index
    %27 = vector.load %arg5[%c0_11, %c111] : memref<8x512xf32, #tpu.memory_space<vmem>>, vector<8x256xf32>
    %cst_12 = arith.constant 0.000000e+00 : f32
    %28 = vector.shape_cast %18 : vector<1x256xi1> to vector<1x256xi1>
    %29 = vector.broadcast %28 : vector<1x256xi1> to vector<8x256xi1>
    %30 = vector.broadcast %cst_12 : f32 to vector<8x256xf32>
    %31 = arith.select %29, %27, %30 : vector<8x256xi1>, vector<8x256xf32>
    %c0_13 = arith.constant 0 : index
    %c112 = arith.constant 112 : index
    %32 = vector.load %arg5[%c0_13, %c112] : memref<8x512xf32, #tpu.memory_space<vmem>>, vector<8x256xf32>
    %c0_14 = arith.constant 0 : index
    %c113 = arith.constant 113 : index
    %33 = vector.load %arg5[%c0_14, %c113] : memref<8x512xf32, #tpu.memory_space<vmem>>, vector<8x256xf32>
    %cst_15 = arith.constant 0.000000e+00 : f32
    %34 = vector.shape_cast %20 : vector<1x256xi1> to vector<1x256xi1>
    %35 = vector.broadcast %34 : vector<1x256xi1> to vector<8x256xi1>
    %36 = vector.broadcast %cst_15 : f32 to vector<8x256xf32>
    %37 = arith.select %35, %33, %36 : vector<8x256xi1>, vector<8x256xf32>
    %c0_16 = arith.constant 0 : index
    %c127 = arith.constant 127 : index
    %38 = vector.load %arg5[%c0_16, %c127] : memref<8x512xf32, #tpu.memory_space<vmem>>, vector<8x256xf32>
    %cst_17 = arith.constant 0.000000e+00 : f32
    %39 = vector.shape_cast %18 : vector<1x256xi1> to vector<1x256xi1>
    %40 = vector.broadcast %39 : vector<1x256xi1> to vector<8x256xi1>
    %41 = vector.broadcast %cst_17 : f32 to vector<8x256xf32>
    %42 = arith.select %40, %38, %41 : vector<8x256xi1>, vector<8x256xf32>
    %c0_18 = arith.constant 0 : index
    %c128_19 = arith.constant 128 : index
    %43 = vector.load %arg5[%c0_18, %c128_19] : memref<8x512xf32, #tpu.memory_space<vmem>>, vector<8x256xf32>
    %c0_20 = arith.constant 0 : index
    %c129 = arith.constant 129 : index
    %44 = vector.load %arg5[%c0_20, %c129] : memref<8x512xf32, #tpu.memory_space<vmem>>, vector<8x256xf32>
    %cst_21 = arith.constant 0.000000e+00 : f32
    %45 = vector.shape_cast %20 : vector<1x256xi1> to vector<1x256xi1>
    %46 = vector.broadcast %45 : vector<1x256xi1> to vector<8x256xi1>
    %47 = vector.broadcast %cst_21 : f32 to vector<8x256xf32>
    %48 = arith.select %46, %44, %47 : vector<8x256xi1>, vector<8x256xf32>
    %c0_22 = arith.constant 0 : index
    %c143 = arith.constant 143 : index
    %49 = vector.load %arg5[%c0_22, %c143] : memref<8x512xf32, #tpu.memory_space<vmem>>, vector<8x256xf32>
    %cst_23 = arith.constant 0.000000e+00 : f32
    %50 = vector.shape_cast %18 : vector<1x256xi1> to vector<1x256xi1>
    %51 = vector.broadcast %50 : vector<1x256xi1> to vector<8x256xi1>
    %52 = vector.broadcast %cst_23 : f32 to vector<8x256xf32>
    %53 = arith.select %51, %49, %52 : vector<8x256xi1>, vector<8x256xf32>
    %c0_24 = arith.constant 0 : index
    %c144 = arith.constant 144 : index
    %54 = vector.load %arg5[%c0_24, %c144] : memref<8x512xf32, #tpu.memory_space<vmem>>, vector<8x256xf32>
    %c0_25 = arith.constant 0 : index
    %c145 = arith.constant 145 : index
    %55 = vector.load %arg5[%c0_25, %c145] : memref<8x512xf32, #tpu.memory_space<vmem>>, vector<8x256xf32>
    %cst_26 = arith.constant 0.000000e+00 : f32
    %56 = vector.shape_cast %20 : vector<1x256xi1> to vector<1x256xi1>
    %57 = vector.broadcast %56 : vector<1x256xi1> to vector<8x256xi1>
    %58 = vector.broadcast %cst_26 : f32 to vector<8x256xf32>
    %59 = arith.select %57, %55, %58 : vector<8x256xi1>, vector<8x256xf32>
    %60 = tpu.concatenate %31, %32, %37, %42, %43, %48, %53, %54, %59 in 0 : vector<8x256xf32>, vector<8x256xf32>, vector<8x256xf32>, vector<8x256xf32>, vector<8x256xf32>, vector<8x256xf32>, vector<8x256xf32>, vector<8x256xf32>, vector<8x256xf32> -> vector<72x256xf32>
    %cst_27 = arith.constant dense<0.000000e+00> : vector<8x256xf32>
    %61 = tpu.matmul %23, %60, %cst_27 {dimension_numbers = #tpu.dot_dimension_numbers<[1], [0], [0], [1], [0, 0, 1, 1], [], []>} : vector<8x72xf32>, vector<72x256xf32>, vector<8x256xf32> -> vector<8x256xf32>
    %cst_28 = arith.constant dense<0.000000e+00> : vector<8xf32>
    %62 = vector.multi_reduction <add>, %61, %cst_28 [1] : vector<8x256xf32> to vector<8xf32>
    %63 = vector.shape_cast %62 : vector<8xf32> to vector<8x1xf32>
    %cst_29 = arith.constant 2.560000e+02 : f32
    %64 = vector.broadcast %cst_29 : f32 to vector<8x1xf32>
    %65 = arith.divf %63, %64 : vector<8x1xf32>
    %66 = vector.broadcast %65 : vector<8x1xf32> to vector<8x256xf32>
    %67 = arith.subf %61, %66 : vector<8x256xf32>
    %68 = arith.mulf %67, %67 : vector<8x256xf32>
    %cst_30 = arith.constant dense<0.000000e+00> : vector<8xf32>
    %69 = vector.multi_reduction <add>, %68, %cst_30 [1] : vector<8x256xf32> to vector<8xf32>
    %70 = vector.shape_cast %69 : vector<8xf32> to vector<8x1xf32>
    %cst_31 = arith.constant 2.560000e+02 : f32
    %71 = vector.broadcast %cst_31 : f32 to vector<8x1xf32>
    %72 = arith.divf %70, %71 : vector<8x1xf32>
    %cst_32 = arith.constant 9.99999974E-6 : f32
    %73 = vector.broadcast %cst_32 : f32 to vector<8x1xf32>
    %74 = arith.addf %72, %73 : vector<8x1xf32>
    %75 = math.rsqrt %74 : vector<8x1xf32>
    %76 = vector.broadcast %75 : vector<8x1xf32> to vector<8x256xf32>
    %77 = arith.mulf %67, %76 : vector<8x256xf32>
    %cst_33 = arith.constant 0.000000e+00 : f32
    %78 = vector.broadcast %cst_33 : f32 to vector<8x256xf32>
    %79 = arith.maximumf %77, %78 : vector<8x256xf32>
    %c0_34 = arith.constant 0 : index
    %c0_35 = arith.constant 0 : index
    %80 = vector.load %arg3[%c0_34, %c0_35] : memref<8x72xf32, #tpu.memory_space<vmem>>, vector<8x72xf32>
    %cst_36 = arith.constant 0.000000e+00 : f32
    %81 = vector.broadcast %cst_36 : f32 to vector<8x512xf32>
    %c0_37 = arith.constant 0 : index
    %c0_38 = arith.constant 0 : index
    %82 = vector.load %arg5[%c0_37, %c0_38] : memref<8x512xf32, #tpu.memory_space<vmem>>, vector<8x512xf32>
    tpu.vector_store %arg5[%c0_37, %c0_38], %81 {strides = array<i32>} : memref<8x512xf32, #tpu.memory_space<vmem>>, vector<8x512xf32>,
    %c0_39 = arith.constant 0 : index
    %c128_40 = arith.constant 128 : index
    %83 = vector.load %arg5[%c0_39, %c128_40] : memref<8x512xf32, #tpu.memory_space<vmem>>, vector<8x256xf32>
    tpu.vector_store %arg5[%c0_39, %c128_40], %79 {strides = array<i32>} : memref<8x512xf32, #tpu.memory_space<vmem>>, vector<8x256xf32>,
    %c0_41 = arith.constant 0 : index
    %c111_42 = arith.constant 111 : index
    %84 = vector.load %arg5[%c0_41, %c111_42] : memref<8x512xf32, #tpu.memory_space<vmem>>, vector<8x256xf32>
    %cst_43 = arith.constant 0.000000e+00 : f32
    %85 = vector.shape_cast %18 : vector<1x256xi1> to vector<1x256xi1>
    %86 = vector.broadcast %85 : vector<1x256xi1> to vector<8x256xi1>
    %87 = vector.broadcast %cst_43 : f32 to vector<8x256xf32>
    %88 = arith.select %86, %84, %87 : vector<8x256xi1>, vector<8x256xf32>
    %c0_44 = arith.constant 0 : index
    %c112_45 = arith.constant 112 : index
    %89 = vector.load %arg5[%c0_44, %c112_45] : memref<8x512xf32, #tpu.memory_space<vmem>>, vector<8x256xf32>
    %c0_46 = arith.constant 0 : index
    %c113_47 = arith.constant 113 : index
    %90 = vector.load %arg5[%c0_46, %c113_47] : memref<8x512xf32, #tpu.memory_space<vmem>>, vector<8x256xf32>
    %cst_48 = arith.constant 0.000000e+00 : f32
    %91 = vector.shape_cast %20 : vector<1x256xi1> to vector<1x256xi1>
    %92 = vector.broadcast %91 : vector<1x256xi1> to vector<8x256xi1>
    %93 = vector.broadcast %cst_48 : f32 to vector<8x256xf32>
    %94 = arith.select %92, %90, %93 : vector<8x256xi1>, vector<8x256xf32>
    %c0_49 = arith.constant 0 : index
    %c127_50 = arith.constant 127 : index
    %95 = vector.load %arg5[%c0_49, %c127_50] : memref<8x512xf32, #tpu.memory_space<vmem>>, vector<8x256xf32>
    %cst_51 = arith.constant 0.000000e+00 : f32
    %96 = vector.shape_cast %18 : vector<1x256xi1> to vector<1x256xi1>
    %97 = vector.broadcast %96 : vector<1x256xi1> to vector<8x256xi1>
    %98 = vector.broadcast %cst_51 : f32 to vector<8x256xf32>
    %99 = arith.select %97, %95, %98 : vector<8x256xi1>, vector<8x256xf32>
    %c0_52 = arith.constant 0 : index
    %c128_53 = arith.constant 128 : index
    %100 = vector.load %arg5[%c0_52, %c128_53] : memref<8x512xf32, #tpu.memory_space<vmem>>, vector<8x256xf32>
    %c0_54 = arith.constant 0 : index
    %c129_55 = arith.constant 129 : index
    %101 = vector.load %arg5[%c0_54, %c129_55] : memref<8x512xf32, #tpu.memory_space<vmem>>, vector<8x256xf32>
    %cst_56 = arith.constant 0.000000e+00 : f32
    %102 = vector.shape_cast %20 : vector<1x256xi1> to vector<1x256xi1>
    %103 = vector.broadcast %102 : vector<1x256xi1> to vector<8x256xi1>
    %104 = vector.broadcast %cst_56 : f32 to vector<8x256xf32>
    %105 = arith.select %103, %101, %104 : vector<8x256xi1>, vector<8x256xf32>
    %c0_57 = arith.constant 0 : index
    %c143_58 = arith.constant 143 : index
    %106 = vector.load %arg5[%c0_57, %c143_58] : memref<8x512xf32, #tpu.memory_space<vmem>>, vector<8x256xf32>
    %cst_59 = arith.constant 0.000000e+00 : f32
    %107 = vector.shape_cast %18 : vector<1x256xi1> to vector<1x256xi1>
    %108 = vector.broadcast %107 : vector<1x256xi1> to vector<8x256xi1>
    %109 = vector.broadcast %cst_59 : f32 to vector<8x256xf32>
    %110 = arith.select %108, %106, %109 : vector<8x256xi1>, vector<8x256xf32>
    %c0_60 = arith.constant 0 : index
    %c144_61 = arith.constant 144 : index
    %111 = vector.load %arg5[%c0_60, %c144_61] : memref<8x512xf32, #tpu.memory_space<vmem>>, vector<8x256xf32>
    %c0_62 = arith.constant 0 : index
    %c145_63 = arith.constant 145 : index
    %112 = vector.load %arg5[%c0_62, %c145_63] : memref<8x512xf32, #tpu.memory_space<vmem>>, vector<8x256xf32>
    %cst_64 = arith.constant 0.000000e+00 : f32
    %113 = vector.shape_cast %20 : vector<1x256xi1> to vector<1x256xi1>
    %114 = vector.broadcast %113 : vector<1x256xi1> to vector<8x256xi1>
    %115 = vector.broadcast %cst_64 : f32 to vector<8x256xf32>
    %116 = arith.select %114, %112, %115 : vector<8x256xi1>, vector<8x256xf32>
    %117 = tpu.concatenate %88, %89, %94, %99, %100, %105, %110, %111, %116 in 0 : vector<8x256xf32>, vector<8x256xf32>, vector<8x256xf32>, vector<8x256xf32>, vector<8x256xf32>, vector<8x256xf32>, vector<8x256xf32>, vector<8x256xf32>, vector<8x256xf32> -> vector<72x256xf32>
    %cst_65 = arith.constant dense<0.000000e+00> : vector<8x256xf32>
    %118 = tpu.matmul %80, %117, %cst_65 {dimension_numbers = #tpu.dot_dimension_numbers<[1], [0], [0], [1], [0, 0, 1, 1], [], []>} : vector<8x72xf32>, vector<72x256xf32>, vector<8x256xf32> -> vector<8x256xf32>
    %cst_66 = arith.constant dense<0.000000e+00> : vector<8xf32>
    %119 = vector.multi_reduction <add>, %118, %cst_66 [1] : vector<8x256xf32> to vector<8xf32>
    %120 = vector.shape_cast %119 : vector<8xf32> to vector<8x1xf32>
    %cst_67 = arith.constant 2.560000e+02 : f32
    %121 = vector.broadcast %cst_67 : f32 to vector<8x1xf32>
    %122 = arith.divf %120, %121 : vector<8x1xf32>
    %123 = vector.broadcast %122 : vector<8x1xf32> to vector<8x256xf32>
    %124 = arith.subf %118, %123 : vector<8x256xf32>
    %125 = arith.mulf %124, %124 : vector<8x256xf32>
    %cst_68 = arith.constant dense<0.000000e+00> : vector<8xf32>
    %126 = vector.multi_reduction <add>, %125, %cst_68 [1] : vector<8x256xf32> to vector<8xf32>
    %127 = vector.shape_cast %126 : vector<8xf32> to vector<8x1xf32>
    %cst_69 = arith.constant 2.560000e+02 : f32
    %128 = vector.broadcast %cst_69 : f32 to vector<8x1xf32>
    %129 = arith.divf %127, %128 : vector<8x1xf32>
    %cst_70 = arith.constant 9.99999974E-6 : f32
    %130 = vector.broadcast %cst_70 : f32 to vector<8x1xf32>
    %131 = arith.addf %129, %130 : vector<8x1xf32>
    %132 = math.rsqrt %131 : vector<8x1xf32>
    %133 = vector.broadcast %132 : vector<8x1xf32> to vector<8x256xf32>
    %134 = arith.mulf %124, %133 : vector<8x256xf32>
    %cst_71 = arith.constant 0.000000e+00 : f32
    %135 = vector.broadcast %cst_71 : f32 to vector<8x256xf32>
    %136 = arith.maximumf %134, %135 : vector<8x256xf32>
    %c0_72 = arith.constant 0 : index
    %c0_73 = arith.constant 0 : index
    %c0_74 = arith.constant 0 : index
    %137 = vector.load %arg4[%c0_72, %c0_73, %c0_74] : memref<1x8x256xf32, #tpu.memory_space<vmem>>, vector<1x8x256xf32>
    %138 = vector.shape_cast %137 : vector<1x8x256xf32> to vector<8x256xf32>
    %139 = vector.shape_cast %136 : vector<8x256xf32> to vector<1x8x256xf32>
    tpu.vector_store %arg4[%c0_72, %c0_73, %c0_74], %139 {strides = array<i32>} : memref<1x8x256xf32, #tpu.memory_space<vmem>>, vector<1x8x256xf32>,
    return
  }
  func.func @transform_0(%arg0: i32) -> (i32, i32, i32) {
    %c0_i32 = arith.constant 0 : i32
    %c0_i32_0 = arith.constant 0 : i32
    %c0_i32_1 = arith.constant 0 : i32
    return %arg0, %c0_i32, %c0_i32_0 : i32, i32, i32
  }
  func.func @transform_1(%arg0: i32) -> (i32, i32) {
    %c0_i32 = arith.constant 0 : i32
    %c0_i32_0 = arith.constant 0 : i32
    %c0_i32_1 = arith.constant 0 : i32
    return %c0_i32, %c0_i32_0 : i32, i32
  }
  func.func @transform_2(%arg0: i32) -> (i32, i32) {
    %c0_i32 = arith.constant 0 : i32
    %c0_i32_0 = arith.constant 0 : i32
    %c0_i32_1 = arith.constant 0 : i32
    return %c0_i32, %c0_i32_0 : i32, i32
  }
  func.func @transform_3(%arg0: i32) -> (i32, i32, i32) {
    %c0_i32 = arith.constant 0 : i32
    %c0_i32_0 = arith.constant 0 : i32
    %c0_i32_1 = arith.constant 0 : i32
    return %arg0, %c0_i32, %c0_i32_0 : i32, i32, i32
  }
}

</mosaic_0001>

<bundles_post_ra>
// kernel: double_net_forward.1
= control target key start
LH: loop header
LB: loop body
LE: loop exit
PB: predicated region body
PF: predicated region fallthrough
CT: control target
= control target key end

     0   :  { %s905_s12 = smov 0   ;;  %s1150_s0 = inlined_call_operand.vmem [shape: f32[2,4,256], index: 0, kind: input, shape index: {}]   ;;  %s1151_s1 = inlined_call_operand.vmem [shape: f32[8,72], index: 1, kind: input, shape index: {}]   ;;  %s1152_s2 = inlined_call_operand.vmem [shape: f32[8,72], index: 2, kind: input, shape index: {}]   ;;  %s1153_s3 = inlined_call_operand.vmem [shape: f32[2,8,256], index: 3, kind: output, shape index: {}]  }
   0x1 LB: > { %s687_s13 = sadd.s32 4294967295, %s873_s12   ;;  %p691_p0 = scmp.ge.s32.totalorder %s873_s12, 1  ;;  %s873_s12 = sphi %s905_s12, %s13_s12  }
   0x2   : > { %p137_p1 = scmp.lt.s32.totalorder %s873_s12, 3 }
   0x4   : > { %p138_p2 = pnand %p691_p0, %p137_p1 }
   0x5   : > { %v875_v0 = vmov (!%p138_p2), 0.0   ;;  %s876_s14 = smov (!%p138_p2), 17   ;;  %s877_s15 = smov (!%p138_p2), 15   ;;  %v171_v9 = vlaneseq (!%p138_p2)  ;;  %vm229_vm1 = vcmask (!%p138_p2), 138240   ;;  %vm317_vm2 = vcmask (!%p138_p2), 130048  }
   0x6   : > { %141 = sbr.rel (%p138_p2) target bundleno = 1370 (0x55a), region = 32  ;;  %223 = vrot.lane.b32.xlu1 (!%p138_p2), %v875_v0, %s876_s14  ;;  %205 = vst [vmem:[#allocation2 + $0x8] sm:$0xff] (!%p138_p2), %v875_v0  ;;  %206 = vst [vmem:[#allocation2 + $0x10] sm:$0xff] (!%p138_p2), %v875_v0  ;;  %240 = vrot.lane.b32.xlu0 (!%p138_p2), %v875_v0, %s877_s15  ;;  %p161_p3 = scmp.lt.s32.totalorder (!%p138_p2), %s687_s13, 1  ;;  %vm259_vm4 = vcmask (!%p138_p2), 7168   ;;  %vm884_vm5 = vmmov (!%p138_p2), 1  }
   0x7   : > { %401 = vmatprep.mubr.f32.mxu0 (!%p138_p2), %v875_v0  ;;  %605 = vmatprep.mubr.f32.mxu1 (!%p138_p2), %v875_v0  ;;  %s878_s16 = smov (!%p138_p2), 16   ;;  %s879_s21 = smov (!%p138_p2), 1   ;;  %v172_v10 = vand.u32 (!%p138_p2), 127, %v171_v9  ;;  %vm246_vm7 = vcmask (!%p138_p2), 121856   ;;  %vm1154_vm12 = vcmask (!%p138_p2), 1039360   ;;  %vm1156_vm14 = vcmask (!%p138_p2), 916480  }
   0x8   : > { %s880_s22 = smov (!%p138_p2), 127   ;;  %s881_s23 = smov (!%p138_p2), 112  }
   0x9   : > { %s882_s24 = smov (!%p138_p2), 113   ;;  %s883_s25 = smov (!%p138_p2), 111   ;;  %v173_v13 = vadd.s32 (!%p138_p2), 128, %v172_v10  ;;  %v178_v17 = vand.u32 (!%p138_p2), 15, %v172_v10 }
   0xa   : > { %311 = vrot.lane.b32.xlu1 (!%p138_p2), %v875_v0, %s878_s16 }
   0xb   : > { %v185_v16 = vand.u32 (!%p138_p2), 15, %v173_v13  ;;  %vm962_vm3 = vcmp.ge.s32.totalorder (!%p138_p2), %v178_v17, 1  ;;  %vm989_vm10 = vcmp.le.s32.totalorder (!%p138_p2), %v178_v17, 14 }
   0xc   : > { %vm980_vm8 = vmpackc.low (!%p138_p2), %vm884_vm5, %vm962_vm3 }
   0xd   : > { %s1179_s13 = smov (!%p161_p3, %s687_s13), 1  ;;  %vm958_vm0 = vcmp.ge.s32.totalorder %v185_v16, 1  ;;  %vm984_vm9 = vcmp.le.s32.totalorder %v185_v16, 14  ;;  %vm1155_vm13 = vmpackc.low %vm962_vm3, %vm989_vm10 }
   0xe   : > { %s724_s17 = sshll.u32 %s1179_s13, 3  ;;  %253 = vrot.lane.b32.xlu1 %v875_v0, %s879_s21  ;;  %vm971_vm6 = vmpackc.low %vm884_vm5, %vm958_vm0  ;;  %s725_s30 = sshll.u32 %s1179_s13, 4 }
   0xf   : > { %s165_s20 = scalar_lea.vmem %s1150_s0, %s724_s17  ;;  %vm733_vm11 = vmpackc.low %vm958_vm0, %vm984_vm9  ;;  %vm1176_vm0 = vcmask 916480   ;;  %s170_s6 = scalar_lea.vmem %s1153_s3, %s725_s30 }
  0x10   : > { %v202_v1 = vld [vmem:[%s165_s20] sm:$0xff]  ;;  %vm1023_vm15 = vmpackc.low %vm984_vm9, %vm884_vm5 }
  0x11   : > { %v209_v2 = vcombine.high %v202_v1, %v202_v1  ;;  %211 = vst [vmem:[#allocation2 + $0x8] sm:$0xf] %v202_v1 }
  0x13   : > { %212 = vst [vmem:[#allocation2 + $0x10] sm:$0xf] %v209_v2 }
  0x18   : > { %v931_v3 = vld [vmem:[#allocation2 + $0x8] sm:$0xff] }
  0x1a   : > { %v933_v4 = vld [vmem:[#allocation2 + $0x10] sm:$0xff] }
  0x1b   : > { %v792_v5 = vpack.i.bf16 %v933_v4, %v931_v3  ;;  %v812_v6 = vpack.i.bf16 %v875_v0, %v933_v4 }
  0x1d   : > { %793 = vrot.lane.b32.xlu0 %v792_v5, %s876_s14  ;;  %808 = vrot.lane.b32.xlu1 %v792_v5, %s879_s21 }
  0x21   : > { %798 = vrot.lane.b32.xlu0 %v792_v5, %s878_s16  ;;  %272 = vrot.lane.b32.xlu1 %v931_v3, %s880_s22 }
  0x25   : > { %803 = vrot.lane.b32.xlu0 %v792_v5, %s877_s15  ;;  %823 = vrot.lane.b32.xlu1 %v812_v6, %s881_s23 }
  0x29   : > { %813 = vrot.lane.b32.xlu0 %v812_v6, %s880_s22  ;;  %322 = vrot.lane.b32.xlu1 %v931_v3, %s881_s23 }
  0x2d   : > { %818 = vrot.lane.b32.xlu0 %v812_v6, %s882_s24  ;;  %302 = vrot.lane.b32.xlu1 %v875_v0, %s883_s25 }
  0x31   : > { %285 = vrot.lane.b32.xlu0 %v931_v3, %s882_s24 }
  0x35   : > { %300 = vrot.lane.b32.xlu0 %v933_v4, %s883_s25 }
  0x39   : > { %298 = vrot.lane.b32.xlu0 %v931_v3, %s883_s25 }
  0x78   : > { %v224_v7 = vpop.permute.xlu1 %223  ;;  %v241_v11 = vpop.permute.xlu0 %240 }
  0x7c   : > { %v312_v8 = vpop.permute.xlu1 %311 }
  0x80   : > { %v254_v12 = vpop.permute.xlu1 %253 }
  0x8f   : > { %v794_v14 = vpop.permute.xlu0 %793  ;;  %v809_v15 = vpop.permute.xlu1 %808 }
  0x90   : > { %v796_v18 = vunpack.i.h.bf16 %v794_v14  ;;  %v795_v19 = vunpack.i.l.bf16 %v794_v14  ;;  %v811_v23 = vunpack.i.h.bf16 %v809_v15  ;;  %v810_v27 = vunpack.i.l.bf16 %v809_v15 }
  0x92   : > { %v231_v28 = vsel %vm229_vm1, %v795_v19, %v796_v18  ;;  %v230_v31 = vsel %vm229_vm1, %v224_v7, %v795_v19  ;;  %v261_v38 = vsel %vm259_vm4, %v810_v27, %v811_v23  ;;  %v260_v43 = vsel %vm259_vm4, %v254_v12, %v810_v27 }
  0x93   : > { %v799_v20 = vpop.permute.xlu0 %798  ;;  %v273_v22 = vpop.permute.xlu1 %272 }
  0x94   : > { %v801_v24 = vunpack.i.h.bf16 %v799_v20  ;;  %v800_v25 = vunpack.i.l.bf16 %v799_v20 }
  0x96   : > { %v319_v29 = vsel %vm317_vm2, %v800_v25, %v801_v24  ;;  %v318_v32 = vsel %vm317_vm2, %v312_v8, %v800_v25 }
  0x97   : > { %v804_v33 = vpop.permute.xlu0 %803  ;;  %v726_v34 = vpack.c.bf16 %v319_v29, %v231_v28  ;;  %v729_v35 = vpack.c.bf16 %v318_v32, %v230_v31  ;;  %v824_v42 = vpop.permute.xlu1 %823 }
  0x98   : > { %v806_v39 = vunpack.i.h.bf16 %v804_v33  ;;  %v805_v40 = vunpack.i.l.bf16 %v804_v33  ;;  %v826_v51 = vunpack.i.h.bf16 %v824_v42  ;;  %v825_v52 = vunpack.i.l.bf16 %v824_v42 }
  0x99   : > { %728 = vmatprep.subr.msk.bf16.mxu0 %vm971_vm6, %v726_v34 }
  0x9a   : > { %v247_v44 = vsel %vm246_vm7, %v241_v11, %v805_v40  ;;  %v248_v45 = vsel %vm246_vm7, %v805_v40, %v806_v39  ;;  %731 = vmatpush1.bf16.msk.msra.mxu0 %vm980_vm8, %v729_v35  ;;  %v330_v63 = vsel %vm1156_vm14, %v825_v52, %v826_v51  ;;  %v203_v11 = vld [vmem:[%s1151_s1] sm:$0xff] }
  0x9b   : > { %v732_v46 = vpack.c.bf16 %v261_v38, %v248_v45  ;;  %v735_v47 = vpack.c.bf16 %v260_v43, %v247_v44  ;;  %v814_v48 = vpop.permute.xlu0 %813  ;;  %v323_v60 = vpop.permute.xlu1 %322 }
  0x9c   : > { %v816_v49 = vunpack.i.h.bf16 %v814_v48  ;;  %v815_v50 = vunpack.i.l.bf16 %v814_v48  ;;  %v329_v1 = vsel %vm1156_vm14, %v323_v60, %v825_v52  ;;  %vm333_vm14 = vcmask 588800  }
  0x9d   : > { %734 = vmatprep.subr.msk.bf16.mxu0 %vm733_vm11, %v732_v46 }
  0x9e   : > { %v279_v53 = vsel %vm1154_vm12, %v273_v22, %v815_v50  ;;  %v280_v54 = vsel %vm1154_vm12, %v815_v50, %v816_v49  ;;  %737 = vmatpush1.bf16.msk.msra.mxu0 %vm1155_vm13, %v735_v47  ;;  %vm1032_vm12 = vmpackc.low %vm989_vm10, %vm884_vm5  ;;  %vm291_vm13 = vcmask 924672   ;;  %vm304_vm5 = vcmask 908288  }
  0x9f   : > { %v738_v56 = vpack.c.bf16 %v280_v54, %v933_v4  ;;  %v741_v57 = vpack.c.bf16 %v279_v53, %v931_v3  ;;  %v819_v58 = vpop.permute.xlu0 %818  ;;  %v303_v7 = vpop.permute.xlu1 %302 }
  0xa0   : > { %v821_v61 = vunpack.i.h.bf16 %v819_v58  ;;  %v820_v62 = vunpack.i.l.bf16 %v819_v58 }
  0xa1   : > { %740 = vmatprep.subr.msk.bf16.mxu0 %vm1023_vm15, %v738_v56 }
  0xa2   : > { %743 = vmatpush1.bf16.msk.msra.mxu0 %vm1032_vm12, %v741_v57  ;;  %v293_v2 = vsel %vm291_vm13, %v820_v62, %v821_v61 }
  0xa3   : > { %v286_v3 = vpop.permute.xlu0 %285  ;;  %v744_v4 = vpack.c.bf16 %v330_v63, %v293_v2 }
  0xa4   : > { %v292_v5 = vsel %vm291_vm13, %v286_v3, %v820_v62 }
  0xa5   : > { %v747_v6 = vpack.c.bf16 %v329_v1, %v292_v5  ;;  %746 = vmatprep.subr.msk.bf16.mxu0 %vm971_vm6, %v744_v4 }
  0xa7   : > { %v301_v8 = vpop.permute.xlu0 %300  ;;  %749 = vmatpush1.bf16.msk.msra.mxu0 %vm980_vm8, %v747_v6 }
  0xa8   : > { %v306_v9 = vsel %vm304_vm5, %v301_v8, %v303_v7 }
  0xa9   : > { %706 = vmatprep.subr.msk.mxu0 %vm984_vm9, %v306_v9 }
  0xab   : > { %v299_v10 = vpop.permute.xlu0 %298 }
  0xac   : > { %v305_v12 = vsel %vm304_vm5, %v299_v10, %v301_v8 }
  0xad   : > { %707 = vmatpush1.msk.msra.mxu0 %vm989_vm10, %v305_v12 }
  0xae   : > { %708 = vmatmul.mubr.msk.f32.vlgmr.msra.gmra.mrb[0].mxu0 %vm333_vm14, %v203_v11 }
 0x181   : > { %v403_v13 = vpop.f32.mrb[0].mxu0 }
 0x182   : > { %v405_v14 = vpop.f32.mrb[1].mxu0 }
 0x183   : > { %v408_v15 = vadd.f32 %v405_v14, %v403_v13 }
 0x185   : > { %409 = vadd.xlane.f32.xlu1 %v408_v15 }
 0x196   : > { %440 = vrot.lane.b32.xlu1 %v875_v0, %s876_s14 }
 0x19a   : > { %452 = vrot.lane.b32.xlu1 %v875_v0, %s877_s15 }
 0x212   : > { %v410_v16 = vpop.xlane.xlu1 %409 }
 0x213   : > { %v412_v17 = vmul.f32 0.00390625, %v410_v16 }
 0x215   : > { %v413_v18 = vsub.f32 %v403_v13, %v412_v17  ;;  %v414_v19 = vsub.f32 %v405_v14, %v412_v17 }
 0x216   : > { %v441_v39 = vpop.permute.xlu1 %440 }
 0x217   : > { %v415_v20 = vmul.f32 %v413_v18, %v413_v18  ;;  %v416_v22 = vmul.f32 %v414_v19, %v414_v19 }
 0x219   : > { %v417_v23 = vadd.f32 %v416_v22, %v415_v20 }
 0x21a   : > { %v453_v42 = vpop.permute.xlu1 %452 }
 0x21b   : > { %418 = vadd.xlane.f32.xlu0 %v417_v23 }
 0x231   : > { %518 = vrot.lane.b32.xlu0 %v875_v0, %s878_s16 }
 0x235   : > { %464 = vrot.lane.b32.xlu0 %v875_v0, %s879_s21 }
 0x2a8   : > { %v419_v24 = vpop.xlane.xlu0 %418 }
 0x2a9   : > { %v420_v25 = vmul.f32 0.00390625, %v419_v24 }
 0x2ab   : > { %v421_v27 = vadd.f32 1e-05, %v420_v25 }
 0x2ac   : > { %v519_v38 = vpop.permute.xlu0 %518 }
 0x2ad   : > { %863 = vrsqrt.f32 %v421_v27 }
 0x2b0   : > { %v465_v40 = vpop.permute.xlu0 %464 }
 0x2b7   : > { %v864_v28 = vpop.eup %863 }
 0x2b8   : > { %v423_v29 = vmul.f32 %v864_v28, %v413_v18  ;;  %v424_v31 = vmul.f32 %v864_v28, %v414_v19 }
 0x2ba   : > { %v1066_v32 = vmax.f32 %v423_v29, 0.0  ;;  %v1068_v33 = vmax.f32 %v424_v31, 0.0  ;;  %v427_v29 = vld [vmem:[%s1152_s2] sm:$0xff] }
 0x2bc   : > { %432 = vst [vmem:[#allocation2 + $0x8] sm:$0xff] %v1066_v32  ;;  %433 = vst [vmem:[#allocation2 + $0x10] sm:$0xff] %v1068_v33  ;;  %v832_v34 = vpack.i.bf16 %v1068_v33, %v1066_v32  ;;  %v847_v35 = vpack.i.bf16 %v875_v0, %v1068_v33 }
 0x2be   : > { %833 = vrot.lane.b32.xlu1 %v832_v34, %s878_s16  ;;  %828 = vrot.lane.b32.xlu0 %v832_v34, %s876_s14 }
 0x2c2   : > { %838 = vrot.lane.b32.xlu1 %v832_v34, %s877_s15  ;;  %843 = vrot.lane.b32.xlu0 %v832_v34, %s879_s21 }
 0x2c6   : > { %848 = vrot.lane.b32.xlu1 %v847_v35, %s880_s22  ;;  %482 = vrot.lane.b32.xlu0 %v1066_v32, %s880_s22 }
 0x2ca   : > { %853 = vrot.lane.b32.xlu1 %v847_v35, %s882_s24  ;;  %858 = vrot.lane.b32.xlu0 %v847_v35, %s881_s23 }
 0x2ce   : > { %494 = vrot.lane.b32.xlu1 %v1066_v32, %s882_s24  ;;  %528 = vrot.lane.b32.xlu0 %v1066_v32, %s881_s23 }
 0x2d2   : > { %508 = vrot.lane.b32.xlu1 %v1068_v33, %s883_s25  ;;  %510 = vrot.lane.b32.xlu0 %v875_v0, %s883_s25 }
 0x2d6   : > { %506 = vrot.lane.b32.xlu1 %v1066_v32, %s883_s25 }
 0x330   : > { %v834_v43 = vpop.permute.xlu1 %833  ;;  %v829_v44 = vpop.permute.xlu0 %828 }
 0x331   : > { %v836_v45 = vunpack.i.h.bf16 %v834_v43  ;;  %v835_v46 = vunpack.i.l.bf16 %v834_v43  ;;  %v831_v47 = vunpack.i.h.bf16 %v829_v44  ;;  %v830_v48 = vunpack.i.l.bf16 %v829_v44 }
 0x333   : > { %v447_v49 = vsel %vm229_vm1, %v830_v48, %v831_v47  ;;  %v525_v50 = vsel %vm317_vm2, %v835_v46, %v836_v45  ;;  %v446_v51 = vsel %vm229_vm1, %v441_v39, %v830_v48  ;;  %v524_v0 = vsel %vm317_vm2, %v519_v38, %v835_v46 }
 0x334   : > { %v839_v52 = vpop.permute.xlu1 %838  ;;  %v844_v53 = vpop.permute.xlu0 %843  ;;  %v750_v54 = vpack.c.bf16 %v525_v50, %v447_v49  ;;  %v753_v56 = vpack.c.bf16 %v524_v0, %v446_v51  ;;  %vm1173_vm1 = vcmask 1039360  }
 0x335   : > { %v841_v57 = vunpack.i.h.bf16 %v839_v52  ;;  %v840_v58 = vunpack.i.l.bf16 %v839_v52  ;;  %v846_v60 = vunpack.i.h.bf16 %v844_v53  ;;  %v845_v61 = vunpack.i.l.bf16 %v844_v53  ;;  %vm1174_vm2 = vmmov %vm1173_vm1 }
 0x336   : > { %752 = vmatprep.subr.msk.bf16.mxu1 %vm971_vm6, %v750_v54 }
 0x337   : > { %v458_v62 = vsel %vm246_vm7, %v453_v42, %v840_v58  ;;  %v459_v63 = vsel %vm246_vm7, %v840_v58, %v841_v57  ;;  %v470_v1 = vsel %vm259_vm4, %v465_v40, %v845_v61  ;;  %v471_v2 = vsel %vm259_vm4, %v845_v61, %v846_v60  ;;  %755 = vmatpush1.bf16.msk.msra.mxu1 %vm980_vm8, %v753_v56  ;;  %vm1175_vm4 = vmpackc.low %vm962_vm3, %vm989_vm10 }
 0x338   : > { %v756_v3 = vpack.c.bf16 %v471_v2, %v459_v63  ;;  %v759_v4 = vpack.c.bf16 %v470_v1, %v458_v62  ;;  %v849_v5 = vpop.permute.xlu1 %848  ;;  %v483_v6 = vpop.permute.xlu0 %482  ;;  %vm1177_vm3 = vmmov %vm1176_vm0 }
 0x339   : > { %v851_v7 = vunpack.i.h.bf16 %v849_v5  ;;  %v850_v8 = vunpack.i.l.bf16 %v849_v5 }
 0x33a   : > { %758 = vmatprep.subr.msk.bf16.mxu1 %vm733_vm11, %v756_v3 }
 0x33b   : > { %v489_v9 = vsel %vm1173_vm1, %v850_v8, %v851_v7  ;;  %v488_v10 = vsel %vm1174_vm2, %v483_v6, %v850_v8  ;;  %761 = vmatpush1.bf16.msk.msra.mxu1 %vm1175_vm4, %v759_v4 }
 0x33c   : > { %v762_v11 = vpack.c.bf16 %v489_v9, %v1068_v33  ;;  %v765_v12 = vpack.c.bf16 %v488_v10, %v1066_v32  ;;  %v854_v13 = vpop.permute.xlu1 %853  ;;  %v859_v21 = vpop.permute.xlu0 %858 }
 0x33d   : > { %v856_v14 = vunpack.i.h.bf16 %v854_v13  ;;  %v855_v15 = vunpack.i.l.bf16 %v854_v13  ;;  %v861_v16 = vunpack.i.h.bf16 %v859_v21  ;;  %v860_v17 = vunpack.i.l.bf16 %v859_v21 }
 0x33e   : > { %764 = vmatprep.subr.msk.bf16.mxu1 %vm1023_vm15, %v762_v11 }
 0x33f   : > { %v501_v18 = vsel %vm291_vm13, %v855_v15, %v856_v14  ;;  %v535_v26 = vsel %vm1176_vm0, %v860_v17, %v861_v16  ;;  %767 = vmatpush1.bf16.msk.msra.mxu1 %vm1032_vm12, %v765_v12 }
 0x340   : > { %v768_v19 = vpack.c.bf16 %v535_v26, %v501_v18  ;;  %v495_v20 = vpop.permute.xlu1 %494  ;;  %v529_v22 = vpop.permute.xlu0 %528 }
 0x341   : > { %v500_v23 = vsel %vm291_vm13, %v495_v20, %v855_v15  ;;  %v534_v24 = vsel %vm1177_vm3, %v529_v22, %v860_v17 }
 0x342   : > { %v771_v25 = vpack.c.bf16 %v534_v24, %v500_v23  ;;  %770 = vmatprep.subr.msk.bf16.mxu1 %vm971_vm6, %v768_v19 }
 0x344   : > { %v509_v55 = vpop.permute.xlu1 %508  ;;  %v511_v27 = vpop.permute.xlu0 %510  ;;  %773 = vmatpush1.bf16.msk.msra.mxu1 %vm980_vm8, %v771_v25 }
 0x345   : > { %v513_v28 = vsel %vm304_vm5, %v509_v55, %v511_v27 }
 0x346   : > { %719 = vmatprep.subr.msk.mxu1 %vm984_vm9, %v513_v28 }
 0x348   : > { %v507_v59 = vpop.permute.xlu1 %506 }
 0x349   : > { %v512_v31 = vsel %vm304_vm5, %v507_v59, %v509_v55 }
 0x34a   : > { %720 = vmatpush1.msk.msra.mxu1 %vm989_vm10, %v512_v31 }
 0x34b   : > { %721 = vmatmul.mubr.msk.f32.vlgmr.msra.gmra.mrb[0].mxu1 %vm333_vm14, %v427_v29 }
 0x41e   : > { %v607_v30 = vpop.f32.mrb[0].mxu1 }
 0x41f   : > { %v609_v36 = vpop.f32.mrb[1].mxu1 }
 0x420   : > { %v612_v32 = vadd.f32 %v609_v36, %v607_v30 }
 0x422   : > { %613 = vadd.xlane.f32.xlu0 %v612_v32 }
 0x4af   : > { %v614_v33 = vpop.xlane.xlu0 %613 }
 0x4b0   : > { %v615_v37 = vmul.f32 0.00390625, %v614_v33 }
 0x4b2   : > { %v616_v34 = vsub.f32 %v607_v30, %v615_v37  ;;  %v617_v35 = vsub.f32 %v609_v36, %v615_v37 }
 0x4b4   : > { %v618_v38 = vmul.f32 %v616_v34, %v616_v34  ;;  %v619_v39 = vmul.f32 %v617_v35, %v617_v35 }
 0x4b6   : > { %v620_v40 = vadd.f32 %v619_v39, %v618_v38 }
 0x4b8   : > { %621 = vadd.xlane.f32.xlu1 %v620_v40 }
 0x545   : > { %v622_v42 = vpop.xlane.xlu1 %621 }
 0x546   : > { %v623_v43 = vmul.f32 0.00390625, %v622_v42 }
 0x548   : > { %v624_v44 = vadd.f32 1e-05, %v623_v43 }
 0x54a   : > { %865 = vrsqrt.f32 %v624_v44 }
 0x554   : > { %v866_v41 = vpop.eup %865 }
 0x555   : > { %v626_v45 = vmul.f32 %v866_v41, %v616_v34  ;;  %v627_v46 = vmul.f32 %v866_v41, %v617_v35 }
 0x557   : > { %v628_v47 = vmax.f32 %v626_v45, 0.0  ;;  %v629_v48 = vmax.f32 %v627_v46, 0.0 }
 0x559   : > { %630 = vst [vmem:[%s170_s6] sm:$0xff] %v628_v47  ;;  %631 = vst [vmem:[%s170_s6 + $0x8] sm:$0xff] %v629_v48 }
 0x55a PF: > { %s13_s12 = sadd.s32 1, %s873_s12  }
 0x55b   : > { %p10_p4 = scmp.ge.s32.totalorder %s13_s12, 4  }
 0x55d   :  { %12 = sbr.rel (!%p10_p4) target bundleno = 1 (0x1), region = 62 }

</bundles_post_ra>
